<compile_context>
chip_gen: v6e
topology: v6e:2x2x1
jax: 0.10.0
libtpu: 0.0.40
codegen_flags: <defaults>
</compile_context>

<pallas_src>
import functools

import jax
import jax.numpy as jnp
from jax.experimental import pallas as pl
from jax.experimental.pallas import tpu as pltpu

_LANE = 128


def _round_up(x: int, m: int) -> int:
    return ((x + m - 1) // m) * m


def _cdiv(a: int, b: int) -> int:
    return (a + b - 1) // b


def _sublane(dtype) -> int:
    return {4: 8, 2: 16, 1: 32}.get(jnp.dtype(dtype).itemsize, 8)


def _pad2d(x, rows, cols):
    r, c = x.shape
    if r == rows and c == cols:
        return x
    return jnp.pad(x, ((0, rows - r), (0, cols - c)))


def _vmem_budget_bytes() -> int:
    """Generation-aware VMEM budget (leaves headroom for Mosaic scratch)."""
    cap = 0
    try:
        info = pltpu.get_tpu_info()
        cap = int(getattr(info, "vmem_capacity_bytes", 0) or 0)
    except Exception:
        cap = 0
    if cap <= 0:
        cap = 64 * 1024 * 1024          # conservative default (valid on v7x)
    cap = min(cap, 128 * 1024 * 1024)
    return max(32 * 1024 * 1024, cap - 8 * 1024 * 1024)


def _maybe_buffered_spec(block, index_map, depth):
    """BlockSpec with optional multi-buffering (falls back gracefully)."""
    if depth > 2 and hasattr(pl, "Buffered"):
        try:
            return pl.BlockSpec(block, index_map, pipeline_mode=pl.Buffered(depth))
        except TypeError:
            pass
    return pl.BlockSpec(block, index_map)


def _choose_reduction_tiling(total_pad, block_hint, avail_bytes, bytes_per_unit):
    """Split a 128-aligned reduction axis into equal 128-aligned tiles.

    The tile is capped by `block_hint` (if given) and by the VMEM left for the
    (multi-buffered) input tiles; padding added here never exceeds one 128-unit
    per tile (no whole blocks of zeros)."""
    max_units = max(1, avail_bytes // max(1, bytes_per_unit))
    cap = min(4096, max_units * _LANE)
    if block_hint is not None:
        cap = min(cap, _round_up(int(block_hint), _LANE))
    cap = max(_LANE, cap)
    num_tiles = _cdiv(total_pad, cap)
    # Avoid a degenerate single-step grid when splitting adds no padding, so the
    # input DMA overlaps compute.
    if num_tiles == 1 and total_pad >= 2 * _LANE and total_pad % (2 * _LANE) == 0:
        num_tiles = 2
    tile = _round_up(_cdiv(total_pad, num_tiles), _LANE)
    return tile, num_tiles, tile * num_tiles


# ---------------------------------------------------------------------------
# Path A1: N <= D, small N.  Stacked Gram panels, D is the reduction axis.
#   fs = [f_t; f_a; f_v]  (3Np, td)   ->   H_x += fs @ f_x^T  (3Np, Np)
# The panels contain all diagonal and cross Grams; cross-Gram traces are the
# mapping sums, so no per-step elementwise/mapping reductions are needed.
# ---------------------------------------------------------------------------
def _hgr_stacked_gram_kernel(ft_ref, fa_ref, fv_ref, out_ref,
                             h_t, h_a, h_v, rs,
                             *, n_true, d_true, np_):
    k = pl.program_id(0)

    @pl.when(k == 0)
    def _init():
        h_t[...] = jnp.zeros_like(h_t)
        h_a[...] = jnp.zeros_like(h_a)
        h_v[...] = jnp.zeros_like(h_v)
        rs[...] = jnp.zeros_like(rs)

    ft = ft_ref[...]
    fa = fa_ref[...]
    fv = fv_ref[...]
    fs = jnp.concatenate([ft, fa, fv], axis=0)               # (3Np, td)

    dims = (((1,), (1,)), ((), ()))                           # A @ B^T (lane contraction)
    h_t[...] += jax.lax.dot_general(fs, ft, dims, preferred_element_type=jnp.float32)
    h_a[...] += jax.lax.dot_general(fs, fa, dims, preferred_element_type=jnp.float32)
    h_v[...] += jax.lax.dot_general(fs, fv, dims, preferred_element_type=jnp.float32)

    # Single row-sum reduction per step (for the mean correction).
    rs[...] += jnp.sum(fs.astype(jnp.float32), axis=1, keepdims=True)

    @pl.when(k == pl.num_programs(0) - 1)
    def _finalize():
        d_f = jnp.float32(d_true)
        inv_n = jnp.float32(1.0 / n_true)
        inv_d = jnp.float32(1.0 / d_true)
        inv_dm1_sq = jnp.float32(1.0 / ((d_true - 1) * (d_true - 1)))

        mu = rs[...] * inv_d                                  # (3Np, 1)
        mu_t = mu[0:np_, :]
        mu_a = mu[np_:2 * np_, :]
        mu_v = mu[2 * np_:3 * np_, :]

        # Sublane-aligned block extraction from the panels.
        g_tt = h_t[0:np_, :]
        g_at = h_t[np_:2 * np_, :]          # trace -> mapping sum (t, a)
        g_vt = h_t[2 * np_:3 * np_, :]      # trace -> mapping sum (t, v)
        g_aa = h_a[np_:2 * np_, :]
        g_va = h_a[2 * np_:3 * np_, :]      # trace -> mapping sum (a, v)
        g_vv = h_v[2 * np_:3 * np_, :]

        def trace(g):
            r = jax.lax.broadcasted_iota(jnp.int32, g.shape, 0)
            c = jax.lax.broadcasted_iota(jnp.int32, g.shape, 1)
            return jnp.sum(jnp.where(r == c, g, 0.0))

        def quad(g, m):                                       # m^T g m
            z = jnp.dot(g, m, preferred_element_type=jnp.float32)
            return jnp.sum(z * m)

        def cov_inner(gx, gy, mx, my):
            # sum(cov_x * cov_y) * (D-1)^2  with  cov = (G - D mu mu^T)/(D-1).
            mdot = jnp.sum(mx * my)
            return (jnp.sum(gx * gy)
                    - d_f * quad(gx, my)
                    - d_f * quad(gy, mx)
                    + d_f * d_f * mdot * mdot)

        def pair(map_sum, gx, gy, mx, my):
            mapping = map_sum * inv_n
            cov_term = cov_inner(gx, gy, mx, my) * inv_dm1_sq * inv_n
            return mapping - 0.5 * cov_term

        total = (pair(trace(g_at), g_tt, g_aa, mu_t, mu_a)
                 + pair(trace(g_vt), g_tt, g_vv, mu_t, mu_v)
                 + pair(trace(g_va), g_aa, g_vv, mu_a, mu_v))
        out_ref[0, 0] = -total * inv_n


# ---------------------------------------------------------------------------
# Path A2: N <= D, large N.  Per-feature raw Grams (MXU already full at
# Np >= 256); mapping sums fused in the same pass.
# ---------------------------------------------------------------------------
def _hgr_gram_kernel(ft_ref, fa_ref, fv_ref, out_ref,
                     g_t, g_a, g_v, rs_t, rs_a, rs_v, m_ta, m_tv, m_av,
                     *, n_true, d_true):
    k = pl.program_id(0)

    @pl.when(k == 0)
    def _init():
        for ref in (g_t, g_a, g_v, rs_t, rs_a, rs_v, m_ta, m_tv, m_av):
            ref[...] = jnp.zeros_like(ref)

    ft = ft_ref[...]
    fa = fa_ref[...]
    fv = fv_ref[...]

    dims = (((1,), (1,)), ((), ()))
    g_t[...] += jax.lax.dot_general(ft, ft, dims, preferred_element_type=jnp.float32)
    g_a[...] += jax.lax.dot_general(fa, fa, dims, preferred_element_type=jnp.float32)
    g_v[...] += jax.lax.dot_general(fv, fv, dims, preferred_element_type=jnp.float32)

    ft32 = ft.astype(jnp.float32)
    fa32 = fa.astype(jnp.float32)
    fv32 = fv.astype(jnp.float32)

    rs_t[...] += jnp.sum(ft32, axis=1, keepdims=True)
    rs_a[...] += jnp.sum(fa32, axis=1, keepdims=True)
    rs_v[...] += jnp.sum(fv32, axis=1, keepdims=True)

    m_ta[...] += jnp.sum(ft32 * fa32, keepdims=True)
    m_tv[...] += jnp.sum(ft32 * fv32, keepdims=True)
    m_av[...] += jnp.sum(fa32 * fv32, keepdims=True)

    @pl.when(k == pl.num_programs(0) - 1)
    def _finalize():
        d_f = jnp.float32(d_true)
        inv_n = jnp.float32(1.0 / n_true)
        inv_d = jnp.float32(1.0 / d_true)
        inv_dm1_sq = jnp.float32(1.0 / ((d_true - 1) * (d_true - 1)))

        mu_t = rs_t[...] * inv_d
        mu_a = rs_a[...] * inv_d
        mu_v = rs_v[...] * inv_d
        gt, ga, gv = g_t[...], g_a[...], g_v[...]

        def quad(g, m):
            z = jnp.dot(g, m, preferred_element_type=jnp.float32)
            return jnp.sum(z * m)

        def cov_inner(gx, gy, mx, my):
            mdot = jnp.sum(mx * my)
            return (jnp.sum(gx * gy)
                    - d_f * quad(gx, my)
                    - d_f * quad(gy, mx)
                    + d_f * d_f * mdot * mdot)

        def pair(map_ref, gx, gy, mx, my):
            mapping = map_ref[...] * inv_n                              # (1,1)
            cov_term = cov_inner(gx, gy, mx, my) * inv_dm1_sq * inv_n   # scalar
            return mapping - 0.5 * cov_term

        total = (pair(m_ta, gt, ga, mu_t, mu_a)
                 + pair(m_tv, gt, gv, mu_t, mu_v)
                 + pair(m_av, ga, gv, mu_a, mu_v))
        out_ref[0, 0] = (-total * inv_n)[0, 0]


# ---------------------------------------------------------------------------
# Path B: D < N.  Inputs arrive pre-transposed: (d_pad, tn) tiles with D on
# sublanes, samples on lanes.  Centering is a cheap sublane mean; the centered
# cross-Grams are accumulated with the MXU-native A @ B^T lane contraction.
# ---------------------------------------------------------------------------
def _hgr_crossgram_kernel(ft_ref, fa_ref, fv_ref, out_ref,
                          g_ta, g_tv, g_av, m_ta, m_tv, m_av,
                          *, n_true, d_true, mask_d):
    k = pl.program_id(0)

    @pl.when(k == 0)
    def _init():
        for ref in (g_ta, g_tv, g_av, m_ta, m_tv, m_av):
            ref[...] = jnp.zeros_like(ref)

    xt = ft_ref[...]
    xa = fa_ref[...]
    xv = fv_ref[...]

    t32 = xt.astype(jnp.float32)
    a32 = xa.astype(jnp.float32)
    v32 = xv.astype(jnp.float32)

    # Mapping partial sums: reduce only over the sample (lane) axis per step;
    # the remaining feature-axis reduction happens once in finalize.
    m_ta[...] += jnp.sum(t32 * a32, axis=1, keepdims=True)
    m_tv[...] += jnp.sum(t32 * v32, axis=1, keepdims=True)
    m_av[...] += jnp.sum(a32 * v32, axis=1, keepdims=True)

    inv_d = jnp.float32(1.0 / d_true)
    dot_dtype = xt.dtype if xt.dtype == jnp.bfloat16 else jnp.float32
    if mask_d:  # statically skipped when D is already sublane-aligned
        row = jax.lax.broadcasted_iota(jnp.int32, (t32.shape[0], 1), 0)
        dmask = (row < d_true).astype(jnp.float32)

    def center(x32):
        mu = jnp.sum(x32, axis=0, keepdims=True) * inv_d      # (1, tn) per-sample mean
        c = x32 - mu
        if mask_d:
            c = c * dmask                                     # zero padded feature rows
        return c.astype(dot_dtype)

    ct = center(t32)
    ca = center(a32)
    cv = center(v32)

    dims = (((1,), (1,)), ((), ()))            # contract the sample (lane) dim
    g_ta[...] += jax.lax.dot_general(ct, ca, dims, preferred_element_type=jnp.float32)
    g_tv[...] += jax.lax.dot_general(ct, cv, dims, preferred_element_type=jnp.float32)
    g_av[...] += jax.lax.dot_general(ca, cv, dims, preferred_element_type=jnp.float32)

    @pl.when(k == pl.num_programs(0) - 1)
    def _finalize():
        inv_n = jnp.float32(1.0 / n_true)
        inv_dm1_sq = jnp.float32(1.0 / ((d_true - 1) * (d_true - 1)))

        def pair(m_ref, g_ref):
            mapping = jnp.sum(m_ref[...]) * inv_n
            g = g_ref[...]
            cov_term = jnp.sum(g * g) * inv_dm1_sq * inv_n
            return mapping - 0.5 * cov_term

        total = pair(m_ta, g_ta) + pair(m_tv, g_tv) + pair(m_av, g_av)
        out_ref[0, 0] = -total * inv_n


def soft_hgr_loss(f_t, f_a, f_v, *, d_block=None, n_block=None):
    """Pallas implementation of SoftHGRLoss.forward. Returns a scalar (f32)."""
    assert f_t.shape == f_a.shape == f_v.shape and f_t.ndim == 2
    n, d = f_t.shape
    assert d >= 2, "SoftHGRLoss needs feature_dim >= 2 (torch.cov divisor D-1)"

    dtype = f_t.dtype
    itemsize = jnp.dtype(dtype).itemsize
    sub = _sublane(dtype)
    budget = _vmem_budget_bytes()
    margin = 2 * 1024 * 1024
    nbuf_budget = 3  # budget for up to triple-buffered inputs

    if n <= d:
        # ---------------- N x N covariance paths; D is the reduction axis ----
        np_ = _round_up(n, sub)
        d_pad0 = _round_up(d, _LANE)
        # Stacked path only while the extra MXU MACs stay hidden under HBM.
        use_stacked = np_ <= (192 if itemsize <= 2 else 128)

        if use_stacked:
            acc_bytes = 3 * (3 * np_) * max(np_, _LANE) * 4 + (3 * np_) * _LANE * 4
        else:
            acc_bytes = (3 * np_ * max(np_, _LANE) * 4
                         + 3 * np_ * _LANE * 4 + 3 * 8 * _LANE * 4)

        avail = budget - acc_bytes - margin
        bytes_per_unit = 3 * nbuf_budget * np_ * _LANE * itemsize
        td, num_tiles, d_pad = _choose_reduction_tiling(d_pad0, d_block, avail,
                                                        bytes_per_unit)
        grid = (num_tiles,)
        block = (np_, td)
        index_map = lambda k: (0, k)

        x_t = _pad2d(f_t, np_, d_pad)
        x_a = _pad2d(f_a, np_, d_pad)
        x_v = _pad2d(f_v, np_, d_pad)

        if use_stacked:
            kernel = functools.partial(_hgr_stacked_gram_kernel,
                                       n_true=n, d_true=d, np_=np_)
            scratch = ([pltpu.VMEM((3 * np_, np_), jnp.float32) for _ in range(3)]
                       + [pltpu.VMEM((3 * np_, 1), jnp.float32)])
        else:
            # TODO(synk): output-tiled fallback once 3*Np^2 f32 no longer fits
            # in VMEM (Np >~ 2000, v7x); and a two-stage combine for megacore.
            kernel = functools.partial(_hgr_gram_kernel, n_true=n, d_true=d)
            scratch = ([pltpu.VMEM((np_, np_), jnp.float32) for _ in range(3)]
                       + [pltpu.VMEM((np_, 1), jnp.float32) for _ in range(3)]
                       + [pltpu.VMEM((1, 1), jnp.float32) for _ in range(3)])
        inputs = (x_t, x_a, x_v)
    else:
        # ---------------- D x D cross-Gram path; N is the reduction axis -----
        d_pad = _round_up(d, sub)
        n_pad0 = _round_up(n, _LANE)
        acc_bytes = 3 * d_pad * max(d_pad, _LANE) * 4 + 3 * d_pad * _LANE * 4

        avail = budget - acc_bytes - margin
        bytes_per_unit = 3 * nbuf_budget * d_pad * _LANE * itemsize
        tn, num_tiles, n_pad = _choose_reduction_tiling(n_pad0, n_block, avail,
                                                        bytes_per_unit)
        grid = (num_tiles,)
        block = (d_pad, tn)
        index_map = lambda k: (0, k)

        def prep(x):  # transpose + pad fused into a single XLA copy
            return _pad2d(jnp.transpose(x), d_pad, n_pad)

        inputs = (prep(f_t), prep(f_a), prep(f_v))
        kernel = functools.partial(_hgr_crossgram_kernel,
                                   n_true=n, d_true=d, mask_d=(d_pad != d))
        scratch = ([pltpu.VMEM((d_pad, d_pad), jnp.float32) for _ in range(3)]
                   + [pltpu.VMEM((d_pad, 1), jnp.float32) for _ in range(3)])

    nbuf_eff = 3 if num_tiles >= 3 else 2
    in_spec = _maybe_buffered_spec(block, index_map, nbuf_eff)

    out = pl.pallas_call(
        kernel,
        out_shape=jax.ShapeDtypeStruct((1, 1), jnp.float32),
        grid=grid,
        in_specs=[in_spec, in_spec, in_spec],
        out_specs=pl.BlockSpec(memory_space=pltpu.MemorySpace.SMEM),
        scratch_shapes=scratch,
        compiler_params=pltpu.CompilerParams(
            dimension_semantics=("arbitrary",),   # reduction axis
            vmem_limit_bytes=int(budget),
        ),
    )(*inputs)
    return out[0, 0]


def _soft_hgr_ref(f_t, f_a, f_v):
    """Plain-JAX reference mirroring the PyTorch module, for validation."""
    n = f_t.shape[0]

    def cov(x):
        xc = x - jnp.mean(x, axis=1, keepdims=True)
        return xc @ xc.T / (x.shape[1] - 1)

    feats = [f_t, f_a, f_v]
    total = 0.0
    for i in range(2):
        for j in range(i + 1, 3):
            x, y = feats[i], feats[j]
            mapping = jnp.mean(jnp.sum(x * y, axis=-1), axis=0)
            cov_term = jnp.trace(cov(x) @ cov(y)) / n
            total = total + (mapping - cov_term / 2.0)
    return -total / n


if __name__ == "__main__":
    key = jax.random.PRNGKey(0)

    # (N, D, d_block, n_block): exercises the stacked and per-feature N<=D
    # paths, the transposed D<N path, ragged N / D padding & masking, and
    # multi-step pipelined reduction grids.
    cases = [
        (8, 32, None, None),     # stacked N<=D path, single reduction tile
        (8, 300, 128, None),     # stacked N<=D path, D padded 300->384, grid (3,)
        (6, 40, None, None),     # stacked N<=D path, ragged N padded 6->8
        (272, 640, 256, None),   # per-feature-Gram N<=D path (N_pad > 128), grid (3,)
        (90, 16, None, None),    # D<N path, single tile
        (300, 12, None, 128),    # D<N path, ragged D masked (12->16), grid (3,)
    ]
    for idx, (n, d, db, nb) in enumerate(cases):
        k1, k2, k3 = jax.random.split(jax.random.fold_in(key, idx), 3)
        f_t = jax.random.normal(k1, (n, d), dtype=jnp.float32)
        f_a = jax.random.normal(k2, (n, d), dtype=jnp.float32)
        f_v = jax.random.normal(k3, (n, d), dtype=jnp.float32)

        got = jax.block_until_ready(
            soft_hgr_loss(f_t, f_a, f_v, d_block=db, n_block=nb))
        want = jax.block_until_ready(_soft_hgr_ref(f_t, f_a, f_v))
        assert jnp.allclose(got, want, rtol=2e-4, atol=2e-4), \
            (n, d, float(got), float(want))

    print("KERNEL_OK")
</pallas_src>

<mosaic_0001>
module attributes {stable_mosaic.version = 11 : i64} {
  func.func @_hgr_stacked_gram_kernel(%arg0: i32, %arg1: memref<8x128xf32, #tpu.memory_space<vmem>>, %arg2: memref<8x128xf32, #tpu.memory_space<vmem>>, %arg3: memref<8x128xf32, #tpu.memory_space<vmem>>, %arg4: memref<1x1xf32, #tpu.memory_space<smem>>, %arg5: memref<24x8xf32, #tpu.memory_space<vmem>>, %arg6: memref<24x8xf32, #tpu.memory_space<vmem>>, %arg7: memref<24x8xf32, #tpu.memory_space<vmem>>, %arg8: memref<24x1xf32, #tpu.memory_space<vmem>>) attributes {dimension_semantics = [#tpu.dimension_semantics<arbitrary>], iteration_bounds = array<i64: 1>, scalar_prefetch = 0 : i64, scratch_operands = 4 : i64, tpu.core_type = #tpu.core_type<tc>, window_params = [{transform_indices = @transform_0, window_bounds = array<i64: 8, 128>}, {transform_indices = @transform_1, window_bounds = array<i64: 8, 128>}, {transform_indices = @transform_2, window_bounds = array<i64: 8, 128>}, {transform_indices = @transform_3, window_bounds = array<i64: 1, 1>}]} {
    %c0_i32 = arith.constant 0 : i32
    %0 = arith.cmpi eq, %arg0, %c0_i32 : i32
    %1 = arith.extui %0 : i1 to i32
    %c0_i32_0 = arith.constant 0 : i32
    %2 = arith.cmpi ne, %1, %c0_i32_0 : i32
    scf.if %2 {
      %cst_27 = arith.constant 0.000000e+00 : f32
      %27 = vector.broadcast %cst_27 : f32 to vector<24x8xf32>
      %c0_28 = arith.constant 0 : index
      %c0_29 = arith.constant 0 : index
      %28 = vector.load %arg5[%c0_28, %c0_29] : memref<24x8xf32, #tpu.memory_space<vmem>>, vector<24x8xf32>
      tpu.vector_store %arg5[%c0_28, %c0_29], %27 {strides = array<i32>} : memref<24x8xf32, #tpu.memory_space<vmem>>, vector<24x8xf32>,
      %cst_30 = arith.constant 0.000000e+00 : f32
      %29 = vector.broadcast %cst_30 : f32 to vector<24x8xf32>
      %c0_31 = arith.constant 0 : index
      %c0_32 = arith.constant 0 : index
      %30 = vector.load %arg6[%c0_31, %c0_32] : memref<24x8xf32, #tpu.memory_space<vmem>>, vector<24x8xf32>
      tpu.vector_store %arg6[%c0_31, %c0_32], %29 {strides = array<i32>} : memref<24x8xf32, #tpu.memory_space<vmem>>, vector<24x8xf32>,
      %cst_33 = arith.constant 0.000000e+00 : f32
      %31 = vector.broadcast %cst_33 : f32 to vector<24x8xf32>
      %c0_34 = arith.constant 0 : index
      %c0_35 = arith.constant 0 : index
      %32 = vector.load %arg7[%c0_34, %c0_35] : memref<24x8xf32, #tpu.memory_space<vmem>>, vector<24x8xf32>
      tpu.vector_store %arg7[%c0_34, %c0_35], %31 {strides = array<i32>} : memref<24x8xf32, #tpu.memory_space<vmem>>, vector<24x8xf32>,
      %cst_36 = arith.constant 0.000000e+00 : f32
      %33 = vector.broadcast %cst_36 : f32 to vector<24x1xf32>
      %c0_37 = arith.constant 0 : index
      %c0_38 = arith.constant 0 : index
      %34 = vector.load %arg8[%c0_37, %c0_38] : memref<24x1xf32, #tpu.memory_space<vmem>>, vector<24x1xf32>
      tpu.vector_store %arg8[%c0_37, %c0_38], %33 {strides = array<i32>} : memref<24x1xf32, #tpu.memory_space<vmem>>, vector<24x1xf32>,
    } else {
    }
    %c0 = arith.constant 0 : index
    %c0_1 = arith.constant 0 : index
    %3 = vector.load %arg1[%c0, %c0_1] : memref<8x128xf32, #tpu.memory_space<vmem>>, vector<8x128xf32>
    %c0_2 = arith.constant 0 : index
    %c0_3 = arith.constant 0 : index
    %4 = vector.load %arg2[%c0_2, %c0_3] : memref<8x128xf32, #tpu.memory_space<vmem>>, vector<8x128xf32>
    %c0_4 = arith.constant 0 : index
    %c0_5 = arith.constant 0 : index
    %5 = vector.load %arg3[%c0_4, %c0_5] : memref<8x128xf32, #tpu.memory_space<vmem>>, vector<8x128xf32>
    %6 = tpu.concatenate %3, %4, %5 in 0 : vector<8x128xf32>, vector<8x128xf32>, vector<8x128xf32> -> vector<24x128xf32>
    %c0_6 = arith.constant 0 : index
    %c0_7 = arith.constant 0 : index
    %7 = vector.load %arg5[%c0_6, %c0_7] : memref<24x8xf32, #tpu.memory_space<vmem>>, vector<24x8xf32>
    %cst = arith.constant dense<0.000000e+00> : vector<24x8xf32>
    %8 = tpu.matmul %6, %3, %cst {dimension_numbers = #tpu.dot_dimension_numbers<[1], [1], [0], [0], [0, 0, 1, 0], [], []>} : vector<24x128xf32>, vector<8x128xf32>, vector<24x8xf32> -> vector<24x8xf32>
    %9 = arith.addf %7, %8 : vector<24x8xf32>
    %c0_8 = arith.constant 0 : index
    %c0_9 = arith.constant 0 : index
    %10 = vector.load %arg5[%c0_8, %c0_9] : memref<24x8xf32, #tpu.memory_space<vmem>>, vector<24x8xf32>
    tpu.vector_store %arg5[%c0_8, %c0_9], %9 {strides = array<i32>} : memref<24x8xf32, #tpu.memory_space<vmem>>, vector<24x8xf32>,
    %c0_10 = arith.constant 0 : index
    %c0_11 = arith.constant 0 : index
    %11 = vector.load %arg6[%c0_10, %c0_11] : memref<24x8xf32, #tpu.memory_space<vmem>>, vector<24x8xf32>
    %cst_12 = arith.constant dense<0.000000e+00> : vector<24x8xf32>
    %12 = tpu.matmul %6, %4, %cst_12 {dimension_numbers = #tpu.dot_dimension_numbers<[1], [1], [0], [0], [0, 0, 1, 0], [], []>} : vector<24x128xf32>, vector<8x128xf32>, vector<24x8xf32> -> vector<24x8xf32>
    %13 = arith.addf %11, %12 : vector<24x8xf32>
    %c0_13 = arith.constant 0 : index
    %c0_14 = arith.constant 0 : index
    %14 = vector.load %arg6[%c0_13, %c0_14] : memref<24x8xf32, #tpu.memory_space<vmem>>, vector<24x8xf32>
    tpu.vector_store %arg6[%c0_13, %c0_14], %13 {strides = array<i32>} : memref<24x8xf32, #tpu.memory_space<vmem>>, vector<24x8xf32>,
    %c0_15 = arith.constant 0 : index
    %c0_16 = arith.constant 0 : index
    %15 = vector.load %arg7[%c0_15, %c0_16] : memref<24x8xf32, #tpu.memory_space<vmem>>, vector<24x8xf32>
    %cst_17 = arith.constant dense<0.000000e+00> : vector<24x8xf32>
    %16 = tpu.matmul %6, %5, %cst_17 {dimension_numbers = #tpu.dot_dimension_numbers<[1], [1], [0], [0], [0, 0, 1, 0], [], []>} : vector<24x128xf32>, vector<8x128xf32>, vector<24x8xf32> -> vector<24x8xf32>
    %17 = arith.addf %15, %16 : vector<24x8xf32>
    %c0_18 = arith.constant 0 : index
    %c0_19 = arith.constant 0 : index
    %18 = vector.load %arg7[%c0_18, %c0_19] : memref<24x8xf32, #tpu.memory_space<vmem>>, vector<24x8xf32>
    tpu.vector_store %arg7[%c0_18, %c0_19], %17 {strides = array<i32>} : memref<24x8xf32, #tpu.memory_space<vmem>>, vector<24x8xf32>,
    %c0_20 = arith.constant 0 : index
    %c0_21 = arith.constant 0 : index
    %19 = vector.load %arg8[%c0_20, %c0_21] : memref<24x1xf32, #tpu.memory_space<vmem>>, vector<24x1xf32>
    %cst_22 = arith.constant dense<0.000000e+00> : vector<24xf32>
    %20 = vector.multi_reduction <add>, %6, %cst_22 [1] : vector<24x128xf32> to vector<24xf32>
    %21 = vector.shape_cast %20 : vector<24xf32> to vector<24x1xf32>
    %22 = arith.addf %19, %21 : vector<24x1xf32>
    %c0_23 = arith.constant 0 : index
    %c0_24 = arith.constant 0 : index
    %23 = vector.load %arg8[%c0_23, %c0_24] : memref<24x1xf32, #tpu.memory_space<vmem>>, vector<24x1xf32>
    tpu.vector_store %arg8[%c0_23, %c0_24], %22 {strides = array<i32>} : memref<24x1xf32, #tpu.memory_space<vmem>>, vector<24x1xf32>,
    %c0_i32_25 = arith.constant 0 : i32
    %24 = arith.cmpi eq, %arg0, %c0_i32_25 : i32
    %25 = arith.extui %24 : i1 to i32
    %c0_i32_26 = arith.constant 0 : i32
    %26 = arith.cmpi ne, %25, %c0_i32_26 : i32
    scf.if %26 {
      %c0_27 = arith.constant 0 : index
      %c0_28 = arith.constant 0 : index
      %27 = vector.load %arg8[%c0_27, %c0_28] : memref<24x1xf32, #tpu.memory_space<vmem>>, vector<24x1xf32>
      %cst_29 = arith.constant 3.125000e-02 : f32
      %28 = vector.broadcast %cst_29 : f32 to vector<24x1xf32>
      %29 = arith.mulf %27, %28 : vector<24x1xf32>
      %30 = vector.extract_strided_slice %29 {offsets = [0, 0], sizes = [8, 1], strides = [1, 1]} : vector<24x1xf32> to vector<8x1xf32>
      %31 = vector.extract_strided_slice %29 {offsets = [8, 0], sizes = [8, 1], strides = [1, 1]} : vector<24x1xf32> to vector<8x1xf32>
      %32 = vector.extract_strided_slice %29 {offsets = [16, 0], sizes = [8, 1], strides = [1, 1]} : vector<24x1xf32> to vector<8x1xf32>
      %c0_30 = arith.constant 0 : index
      %c0_31 = arith.constant 0 : index
      %33 = vector.load %arg5[%c0_30, %c0_31] : memref<24x8xf32, #tpu.memory_space<vmem>>, vector<8x8xf32>
      %c8 = arith.constant 8 : index
      %c0_32 = arith.constant 0 : index
      %34 = vector.load %arg5[%c8, %c0_32] : memref<24x8xf32, #tpu.memory_space<vmem>>, vector<8x8xf32>
      %c16 = arith.constant 16 : index
      %c0_33 = arith.constant 0 : index
      %35 = vector.load %arg5[%c16, %c0_33] : memref<24x8xf32, #tpu.memory_space<vmem>>, vector<8x8xf32>
      %c8_34 = arith.constant 8 : index
      %c0_35 = arith.constant 0 : index
      %36 = vector.load %arg6[%c8_34, %c0_35] : memref<24x8xf32, #tpu.memory_space<vmem>>, vector<8x8xf32>
      %c16_36 = arith.constant 16 : index
      %c0_37 = arith.constant 0 : index
      %37 = vector.load %arg6[%c16_36, %c0_37] : memref<24x8xf32, #tpu.memory_space<vmem>>, vector<8x8xf32>
      %c16_38 = arith.constant 16 : index
      %c0_39 = arith.constant 0 : index
      %38 = vector.load %arg7[%c16_38, %c0_39] : memref<24x8xf32, #tpu.memory_space<vmem>>, vector<8x8xf32>
      %39 = tpu.iota {dimensions = array<i32: 0>} : vector<8x8xi32>
      %40 = tpu.iota {dimensions = array<i32: 1>} : vector<8x8xi32>
      %41 = arith.cmpi eq, %39, %40 : vector<8x8xi32>
      %cst_40 = arith.constant 0.000000e+00 : f32
      %42 = vector.broadcast %cst_40 : f32 to vector<8x8xf32>
      %43 = arith.select %41, %34, %42 : vector<8x8xi1>, vector<8x8xf32>
      %44 = vector.shape_cast %43 : vector<8x8xf32> to vector<1x8x8xf32>
      %cst_41 = arith.constant dense<0.000000e+00> : vector<1xf32>
      %45 = vector.multi_reduction <add>, %44, %cst_41 [1, 2] : vector<1x8x8xf32> to vector<1xf32>
      %46 = vector.shape_cast %45 : vector<1xf32> to vector<1x1x1xf32>
      %47 = vector.extract %46[0, 0, 0] : f32 from vector<1x1x1xf32>
      %cst_42 = arith.constant 1.250000e-01 : f32
      %48 = arith.mulf %47, %cst_42 : f32
      %49 = arith.mulf %30, %31 : vector<8x1xf32>
      %50 = vector.shape_cast %49 : vector<8x1xf32> to vector<1x8x1xf32>
      %cst_43 = arith.constant dense<0.000000e+00> : vector<1xf32>
      %51 = vector.multi_reduction <add>, %50, %cst_43 [1, 2] : vector<1x8x1xf32> to vector<1xf32>
      %52 = vector.shape_cast %51 : vector<1xf32> to vector<1x1x1xf32>
      %53 = vector.extract %52[0, 0, 0] : f32 from vector<1x1x1xf32>
      %54 = arith.mulf %33, %36 : vector<8x8xf32>
      %55 = vector.shape_cast %54 : vector<8x8xf32> to vector<1x8x8xf32>
      %cst_44 = arith.constant dense<0.000000e+00> : vector<1xf32>
      %56 = vector.multi_reduction <add>, %55, %cst_44 [1, 2] : vector<1x8x8xf32> to vector<1xf32>
      %57 = vector.shape_cast %56 : vector<1xf32> to vector<1x1x1xf32>
      %58 = vector.extract %57[0, 0, 0] : f32 from vector<1x1x1xf32>
      %cst_45 = arith.constant dense<0.000000e+00> : vector<8x1xf32>
      %59 = tpu.matmul %33, %31, %cst_45 {dimension_numbers = #tpu.dot_dimension_numbers<[1], [0], [0], [1], [0, 0, 1, 1], [], []>} : vector<8x8xf32>, vector<8x1xf32>, vector<8x1xf32> -> vector<8x1xf32>
      %60 = arith.mulf %59, %31 : vector<8x1xf32>
      %61 = vector.shape_cast %60 : vector<8x1xf32> to vector<1x8x1xf32>
      %cst_46 = arith.constant dense<0.000000e+00> : vector<1xf32>
      %62 = vector.multi_reduction <add>, %61, %cst_46 [1, 2] : vector<1x8x1xf32> to vector<1xf32>
      %63 = vector.shape_cast %62 : vector<1xf32> to vector<1x1x1xf32>
      %64 = vector.extract %63[0, 0, 0] : f32 from vector<1x1x1xf32>
      %cst_47 = arith.constant 3.200000e+01 : f32
      %65 = arith.mulf %cst_47, %64 : f32
      %66 = arith.subf %58, %65 : f32
      %cst_48 = arith.constant dense<0.000000e+00> : vector<8x1xf32>
      %67 = tpu.matmul %36, %30, %cst_48 {dimension_numbers = #tpu.dot_dimension_numbers<[1], [0], [0], [1], [0, 0, 1, 1], [], []>} : vector<8x8xf32>, vector<8x1xf32>, vector<8x1xf32> -> vector<8x1xf32>
      %68 = arith.mulf %67, %30 : vector<8x1xf32>
      %69 = vector.shape_cast %68 : vector<8x1xf32> to vector<1x8x1xf32>
      %cst_49 = arith.constant dense<0.000000e+00> : vector<1xf32>
      %70 = vector.multi_reduction <add>, %69, %cst_49 [1, 2] : vector<1x8x1xf32> to vector<1xf32>
      %71 = vector.shape_cast %70 : vector<1xf32> to vector<1x1x1xf32>
      %72 = vector.extract %71[0, 0, 0] : f32 from vector<1x1x1xf32>
      %cst_50 = arith.constant 3.200000e+01 : f32
      %73 = arith.mulf %cst_50, %72 : f32
      %74 = arith.subf %66, %73 : f32
      %cst_51 = arith.constant 3.200000e+01 : f32
      %cst_52 = arith.constant 3.200000e+01 : f32
      %75 = arith.mulf %cst_51, %cst_52 : f32
      %76 = arith.mulf %75, %53 : f32
      %77 = arith.mulf %76, %53 : f32
      %78 = arith.addf %74, %77 : f32
      %cst_53 = arith.constant 0.00104058278 : f32
      %79 = arith.mulf %78, %cst_53 : f32
      %cst_54 = arith.constant 1.250000e-01 : f32
      %80 = arith.mulf %79, %cst_54 : f32
      %cst_55 = arith.constant 5.000000e-01 : f32
      %81 = arith.mulf %cst_55, %80 : f32
      %82 = arith.subf %48, %81 : f32
      %83 = tpu.iota {dimensions = array<i32: 0>} : vector<8x8xi32>
      %84 = tpu.iota {dimensions = array<i32: 1>} : vector<8x8xi32>
      %85 = arith.cmpi eq, %83, %84 : vector<8x8xi32>
      %cst_56 = arith.constant 0.000000e+00 : f32
      %86 = vector.broadcast %cst_56 : f32 to vector<8x8xf32>
      %87 = arith.select %85, %35, %86 : vector<8x8xi1>, vector<8x8xf32>
      %88 = vector.shape_cast %87 : vector<8x8xf32> to vector<1x8x8xf32>
      %cst_57 = arith.constant dense<0.000000e+00> : vector<1xf32>
      %89 = vector.multi_reduction <add>, %88, %cst_57 [1, 2] : vector<1x8x8xf32> to vector<1xf32>
      %90 = vector.shape_cast %89 : vector<1xf32> to vector<1x1x1xf32>
      %91 = vector.extract %90[0, 0, 0] : f32 from vector<1x1x1xf32>
      %cst_58 = arith.constant 1.250000e-01 : f32
      %92 = arith.mulf %91, %cst_58 : f32
      %93 = arith.mulf %30, %32 : vector<8x1xf32>
      %94 = vector.shape_cast %93 : vector<8x1xf32> to vector<1x8x1xf32>
      %cst_59 = arith.constant dense<0.000000e+00> : vector<1xf32>
      %95 = vector.multi_reduction <add>, %94, %cst_59 [1, 2] : vector<1x8x1xf32> to vector<1xf32>
      %96 = vector.shape_cast %95 : vector<1xf32> to vector<1x1x1xf32>
      %97 = vector.extract %96[0, 0, 0] : f32 from vector<1x1x1xf32>
      %98 = arith.mulf %33, %38 : vector<8x8xf32>
      %99 = vector.shape_cast %98 : vector<8x8xf32> to vector<1x8x8xf32>
      %cst_60 = arith.constant dense<0.000000e+00> : vector<1xf32>
      %100 = vector.multi_reduction <add>, %99, %cst_60 [1, 2] : vector<1x8x8xf32> to vector<1xf32>
      %101 = vector.shape_cast %100 : vector<1xf32> to vector<1x1x1xf32>
      %102 = vector.extract %101[0, 0, 0] : f32 from vector<1x1x1xf32>
      %cst_61 = arith.constant dense<0.000000e+00> : vector<8x1xf32>
      %103 = tpu.matmul %33, %32, %cst_61 {dimension_numbers = #tpu.dot_dimension_numbers<[1], [0], [0], [1], [0, 0, 1, 1], [], []>} : vector<8x8xf32>, vector<8x1xf32>, vector<8x1xf32> -> vector<8x1xf32>
      %104 = arith.mulf %103, %32 : vector<8x1xf32>
      %105 = vector.shape_cast %104 : vector<8x1xf32> to vector<1x8x1xf32>
      %cst_62 = arith.constant dense<0.000000e+00> : vector<1xf32>
      %106 = vector.multi_reduction <add>, %105, %cst_62 [1, 2] : vector<1x8x1xf32> to vector<1xf32>
      %107 = vector.shape_cast %106 : vector<1xf32> to vector<1x1x1xf32>
      %108 = vector.extract %107[0, 0, 0] : f32 from vector<1x1x1xf32>
      %cst_63 = arith.constant 3.200000e+01 : f32
      %109 = arith.mulf %cst_63, %108 : f32
      %110 = arith.subf %102, %109 : f32
      %cst_64 = arith.constant dense<0.000000e+00> : vector<8x1xf32>
      %111 = tpu.matmul %38, %30, %cst_64 {dimension_numbers = #tpu.dot_dimension_numbers<[1], [0], [0], [1], [0, 0, 1, 1], [], []>} : vector<8x8xf32>, vector<8x1xf32>, vector<8x1xf32> -> vector<8x1xf32>
      %112 = arith.mulf %111, %30 : vector<8x1xf32>
      %113 = vector.shape_cast %112 : vector<8x1xf32> to vector<1x8x1xf32>
      %cst_65 = arith.constant dense<0.000000e+00> : vector<1xf32>
      %114 = vector.multi_reduction <add>, %113, %cst_65 [1, 2] : vector<1x8x1xf32> to vector<1xf32>
      %115 = vector.shape_cast %114 : vector<1xf32> to vector<1x1x1xf32>
      %116 = vector.extract %115[0, 0, 0] : f32 from vector<1x1x1xf32>
      %cst_66 = arith.constant 3.200000e+01 : f32
      %117 = arith.mulf %cst_66, %116 : f32
      %118 = arith.subf %110, %117 : f32
      %cst_67 = arith.constant 3.200000e+01 : f32
      %cst_68 = arith.constant 3.200000e+01 : f32
      %119 = arith.mulf %cst_67, %cst_68 : f32
      %120 = arith.mulf %119, %97 : f32
      %121 = arith.mulf %120, %97 : f32
      %122 = arith.addf %118, %121 : f32
      %cst_69 = arith.constant 0.00104058278 : f32
      %123 = arith.mulf %122, %cst_69 : f32
      %cst_70 = arith.constant 1.250000e-01 : f32
      %124 = arith.mulf %123, %cst_70 : f32
      %cst_71 = arith.constant 5.000000e-01 : f32
      %125 = arith.mulf %cst_71, %124 : f32
      %126 = arith.subf %92, %125 : f32
      %127 = arith.addf %82, %126 : f32
      %128 = tpu.iota {dimensions = array<i32: 0>} : vector<8x8xi32>
      %129 = tpu.iota {dimensions = array<i32: 1>} : vector<8x8xi32>
      %130 = arith.cmpi eq, %128, %129 : vector<8x8xi32>
      %cst_72 = arith.constant 0.000000e+00 : f32
      %131 = vector.broadcast %cst_72 : f32 to vector<8x8xf32>
      %132 = arith.select %130, %37, %131 : vector<8x8xi1>, vector<8x8xf32>
      %133 = vector.shape_cast %132 : vector<8x8xf32> to vector<1x8x8xf32>
      %cst_73 = arith.constant dense<0.000000e+00> : vector<1xf32>
      %134 = vector.multi_reduction <add>, %133, %cst_73 [1, 2] : vector<1x8x8xf32> to vector<1xf32>
      %135 = vector.shape_cast %134 : vector<1xf32> to vector<1x1x1xf32>
      %136 = vector.extract %135[0, 0, 0] : f32 from vector<1x1x1xf32>
      %cst_74 = arith.constant 1.250000e-01 : f32
      %137 = arith.mulf %136, %cst_74 : f32
      %138 = arith.mulf %31, %32 : vector<8x1xf32>
      %139 = vector.shape_cast %138 : vector<8x1xf32> to vector<1x8x1xf32>
      %cst_75 = arith.constant dense<0.000000e+00> : vector<1xf32>
      %140 = vector.multi_reduction <add>, %139, %cst_75 [1, 2] : vector<1x8x1xf32> to vector<1xf32>
      %141 = vector.shape_cast %140 : vector<1xf32> to vector<1x1x1xf32>
      %142 = vector.extract %141[0, 0, 0] : f32 from vector<1x1x1xf32>
      %143 = arith.mulf %36, %38 : vector<8x8xf32>
      %144 = vector.shape_cast %143 : vector<8x8xf32> to vector<1x8x8xf32>
      %cst_76 = arith.constant dense<0.000000e+00> : vector<1xf32>
      %145 = vector.multi_reduction <add>, %144, %cst_76 [1, 2] : vector<1x8x8xf32> to vector<1xf32>
      %146 = vector.shape_cast %145 : vector<1xf32> to vector<1x1x1xf32>
      %147 = vector.extract %146[0, 0, 0] : f32 from vector<1x1x1xf32>
      %cst_77 = arith.constant dense<0.000000e+00> : vector<8x1xf32>
      %148 = tpu.matmul %36, %32, %cst_77 {dimension_numbers = #tpu.dot_dimension_numbers<[1], [0], [0], [1], [0, 0, 1, 1], [], []>} : vector<8x8xf32>, vector<8x1xf32>, vector<8x1xf32> -> vector<8x1xf32>
      %149 = arith.mulf %148, %32 : vector<8x1xf32>
      %150 = vector.shape_cast %149 : vector<8x1xf32> to vector<1x8x1xf32>
      %cst_78 = arith.constant dense<0.000000e+00> : vector<1xf32>
      %151 = vector.multi_reduction <add>, %150, %cst_78 [1, 2] : vector<1x8x1xf32> to vector<1xf32>
      %152 = vector.shape_cast %151 : vector<1xf32> to vector<1x1x1xf32>
      %153 = vector.extract %152[0, 0, 0] : f32 from vector<1x1x1xf32>
      %cst_79 = arith.constant 3.200000e+01 : f32
      %154 = arith.mulf %cst_79, %153 : f32
      %155 = arith.subf %147, %154 : f32
      %cst_80 = arith.constant dense<0.000000e+00> : vector<8x1xf32>
      %156 = tpu.matmul %38, %31, %cst_80 {dimension_numbers = #tpu.dot_dimension_numbers<[1], [0], [0], [1], [0, 0, 1, 1], [], []>} : vector<8x8xf32>, vector<8x1xf32>, vector<8x1xf32> -> vector<8x1xf32>
      %157 = arith.mulf %156, %31 : vector<8x1xf32>
      %158 = vector.shape_cast %157 : vector<8x1xf32> to vector<1x8x1xf32>
      %cst_81 = arith.constant dense<0.000000e+00> : vector<1xf32>
      %159 = vector.multi_reduction <add>, %158, %cst_81 [1, 2] : vector<1x8x1xf32> to vector<1xf32>
      %160 = vector.shape_cast %159 : vector<1xf32> to vector<1x1x1xf32>
      %161 = vector.extract %160[0, 0, 0] : f32 from vector<1x1x1xf32>
      %cst_82 = arith.constant 3.200000e+01 : f32
      %162 = arith.mulf %cst_82, %161 : f32
      %163 = arith.subf %155, %162 : f32
      %cst_83 = arith.constant 3.200000e+01 : f32
      %cst_84 = arith.constant 3.200000e+01 : f32
      %164 = arith.mulf %cst_83, %cst_84 : f32
      %165 = arith.mulf %164, %142 : f32
      %166 = arith.mulf %165, %142 : f32
      %167 = arith.addf %163, %166 : f32
      %cst_85 = arith.constant 0.00104058278 : f32
      %168 = arith.mulf %167, %cst_85 : f32
      %cst_86 = arith.constant 1.250000e-01 : f32
      %169 = arith.mulf %168, %cst_86 : f32
      %cst_87 = arith.constant 5.000000e-01 : f32
      %170 = arith.mulf %cst_87, %169 : f32
      %171 = arith.subf %137, %170 : f32
      %172 = arith.addf %127, %171 : f32
      %cst_88 = arith.constant 0.000000e+00 : f32
      %173 = arith.subf %cst_88, %172 : f32
      %cst_89 = arith.constant 1.250000e-01 : f32
      %174 = arith.mulf %173, %cst_89 : f32
      %c0_90 = arith.constant 0 : index
      %c0_91 = arith.constant 0 : index
      %175 = memref.load %arg4[%c0_90, %c0_91] : memref<1x1xf32, #tpu.memory_space<smem>>
      memref.store %174, %arg4[%c0_90, %c0_91] : memref<1x1xf32, #tpu.memory_space<smem>>
    } else {
    }
    return
  }
  func.func @transform_0(%arg0: i32) -> (i32, i32) {
    %c0_i32 = arith.constant 0 : i32
    %c0_i32_0 = arith.constant 0 : i32
    return %c0_i32, %arg0 : i32, i32
  }
  func.func @transform_1(%arg0: i32) -> (i32, i32) {
    %c0_i32 = arith.constant 0 : i32
    %c0_i32_0 = arith.constant 0 : i32
    return %c0_i32, %arg0 : i32, i32
  }
  func.func @transform_2(%arg0: i32) -> (i32, i32) {
    %c0_i32 = arith.constant 0 : i32
    %c0_i32_0 = arith.constant 0 : i32
    return %c0_i32, %arg0 : i32, i32
  }
  func.func @transform_3(%arg0: i32) -> (i32, i32) {
    %c0_i32 = arith.constant 0 : i32
    %c0_i32_0 = arith.constant 0 : i32
    %c0_i32_1 = arith.constant 0 : i32
    return %c0_i32, %c0_i32_0 : i32, i32
  }
}

</mosaic_0001>

<bundles_post_ra>
// kernel: tpu_custom_call.1
= control target key start
LH: loop header
LB: loop body
LE: loop exit
PB: predicated region body
PF: predicated region fallthrough
CT: control target
= control target key end

     0   :  { %8 = vsyncpa [#allocation7], 0  ;;  %s1399_s0 = inlined_call_operand.hbm [shape: f32[8,128], index: 0, kind: input, shape index: {}]   ;;  %s1400_s1 = inlined_call_operand.hbm [shape: f32[8,128], index: 1, kind: input, shape index: {}]   ;;  %s1401_s2 = inlined_call_operand.hbm [shape: f32[8,128], index: 2, kind: input, shape index: {}]   ;;  %s1402_s3 = inlined_call_operand.hbm [shape: f32[1,1], index: 3, kind: output, shape index: {}]  }
   0x1   :  { %9 = vsyncpa [#allocation10], 0 }
   0x2   :  { %10 = vsyncpa [#allocation8], 0  ;;  %s1229_s12 = smov [#allocation9]   ;;  %s1230_s14 = smov [#allocation6]  }
   0x3   :  { %s27_s13 = sshll.u32 %s1229_s12, 4  ;;  %s17_s15 = sshll.u32 %s1230_s14, 4  ;;  %s28_s13 = int_to_ptr.vmem [resolvable:$true] %s27_s13  ;;  %s18_s15 = int_to_ptr.vmem [resolvable:$true] %s17_s15 }
   0x4   :  { %s1163_s16 = scalar_lea.vmem %s28_s13, 128  ;;  %p1168_p1 = scmp.lt.s32.totalorder %s28_s13, %s28_s13 }
   0x5   :  { %p1164_p0 = scmp.ne.s32.totalorder %s28_s13, %s1163_s16  ;;  %p1169_p2 = scmp.lt.s32.totalorder %s1163_s16, %s1163_s16 }
   0x7   :  { %p1170_p3 = por %p1169_p2, %p1168_p1 }
   0x9   :  { %p1171_p4 = pnand %p1170_p3, %p1164_p0 }
   0xb   :  { %1174 = shalt.err (!%p1171_p4)
}
   0xc   :  { %30 = dma.hbm_to_vmem [thread:$0]  %s1400_s1, 128, %s28_s13, [#allocation10]  }
   0xd   :  { %s1183_s19 = scalar_lea.vmem %s18_s15, 128  ;;  %p1188_p6 = scmp.lt.s32.totalorder %s18_s15, %s18_s15 }
   0xe   :  { %p1184_p5 = scmp.ne.s32.totalorder %s18_s15, %s1183_s19  ;;  %p1189_p7 = scmp.lt.s32.totalorder %s1183_s19, %s1183_s19 }
  0x10   :  { %p1190_p8 = por %p1189_p7, %p1188_p6 }
  0x12   :  { %p1191_p9 = pnand %p1190_p8, %p1184_p5 }
  0x14   :  { %1194 = shalt.err (!%p1191_p9)
}
  0x15   :  { %20 = dma.hbm_to_vmem [thread:$0]  %s1399_s0, 128, %s18_s15, [#allocation7]  }
  0x16   :  { %s1231_s22 = smov [#allocation11]  }
  0x17   :  { %s37_s23 = sshll.u32 %s1231_s22, 4  ;;  %s38_s23 = int_to_ptr.vmem [resolvable:$true] %s37_s23 }
  0x18   :  { %s1203_s24 = scalar_lea.vmem %s38_s23, 128  ;;  %p1208_p11 = scmp.lt.s32.totalorder %s38_s23, %s38_s23 }
  0x19   :  { %p1204_p10 = scmp.ne.s32.totalorder %s38_s23, %s1203_s24  ;;  %p1209_p12 = scmp.lt.s32.totalorder %s1203_s24, %s1203_s24 }
  0x1b   :  { %p1210_p13 = por %p1209_p12, %p1208_p11 }
  0x1d   :  { %p1211_p0 = pnand %p1210_p13, %p1204_p10 }
  0x1f   :  { %1214 = shalt.err (!%p1211_p0)
}
  0x20   :  { %40 = dma.hbm_to_vmem [thread:$0]  %s1401_s2, 128, %s38_s23, [#allocation10]  }
  0x21   :  { %1223 = dma.done.wait [#allocation7], 128  }
  0x22   :  { %1224 = vsyncadd [#allocation7], 4294967168 }
  0x23   :  { %1225 = dma.done.wait [#allocation10], 256  }
  0x24   :  { %1226 = vsyncadd [#allocation10], 4294967040  ;;  %vm64_vm0 = vcmask 7168   ;;  %v1232_v0 = vmov 0.0   ;;  %vm1233_vm1 = vmmov 0   ;;  %v68_v1 = vld [vmem:[#allocation6] sm:$0xff]  ;;  %v370_v37 = vlaneseq }
  0x25   :  { %1056 = vmatprep.subr.mxu0 %v1232_v0  ;;  %1067 = vmatprep.subr.mxu1 %v1232_v0  ;;  %66 = vst.msk [vmem:[#allocation5 + $0x8] sm:$0xff] %vm64_vm0, %v1232_v0  ;;  %65 = vst.msk [vmem:[#allocation5] sm:$0xff] %vm64_vm0, %v1232_v0  ;;  %v69_v2 = vld [vmem:[#allocation9] sm:$0xff]  ;;  %v70_v3 = vld [vmem:[#allocation11] sm:$0xff]  ;;  %vm54_vm2 = vcmask 64512  }
  0x26   :  { %67 = vst.msk [vmem:[#allocation5 + $0x10] sm:$0xff] %vm64_vm0, %v1232_v0  ;;  %1058 = vmatprep.mubr.msk.f32.mxu0 %vm1233_vm1, %v1232_v0  ;;  %1069 = vmatprep.mubr.msk.f32.mxu1 %vm1233_vm1, %v1232_v0  ;;  %v371_v46 = vshrl.u32 %v370_v37, 7  ;;  %v373_v47 = vand.u32 127, %v370_v37 }
  0x27   :  { %1057 = vmatpush3.xpose.msra.mxu0 %v68_v1  ;;  %1068 = vmatpush3.xpose.msra.mxu1 %v69_v2  ;;  %55 = vst.msk [vmem:[#allocation2] sm:$0xff] %vm54_vm2, %v1232_v0  ;;  %56 = vst.msk [vmem:[#allocation2 + $0x8] sm:$0xff] %vm54_vm2, %v1232_v0 }
  0x28   :  { %1078 = vmatprep.subr.mxu0 %v1232_v0  ;;  %344 = vadd.xlane.f32.xlu0 %v69_v2  ;;  %57 = vst.msk [vmem:[#allocation2 + $0x10] sm:$0xff] %vm54_vm2, %v1232_v0  ;;  %58 = vst.msk [vmem:[#allocation3] sm:$0xff] %vm54_vm2, %v1232_v0  ;;  %vm374_vm3 = vcmp.eq.s32.totalorder %v371_v46, %v373_v47 }
  0x29   :  { %346 = vadd.xlane.f32.xlu1 %v70_v3  ;;  %1089 = vmatprep.subr.mxu1 %v1232_v0  ;;  %59 = vst.msk [vmem:[#allocation3 + $0x8] sm:$0xff] %vm54_vm2, %v1232_v0  ;;  %60 = vst.msk [vmem:[#allocation3 + $0x10] sm:$0xff] %vm54_vm2, %v1232_v0 }
  0x2a   :  { %1059 = vmatmul.mubr.f32.vlgmr.msra.gmra.mxu0 %v68_v1  ;;  %1070 = vmatmul.mubr.f32.vlgmr.msra.gmra.mxu1 %v68_v1  ;;  %61 = vst.msk [vmem:[#allocation4] sm:$0xff] %vm54_vm2, %v1232_v0  ;;  %62 = vst.msk [vmem:[#allocation4 + $0x8] sm:$0xff] %vm54_vm2, %v1232_v0 }
  0x2b   :  { %1079 = vmatpush3.xpose.msra.mxu0 %v70_v3  ;;  %1061 = vmatprep.mubr.msk.f32.mxu0 %vm1233_vm1, %v1232_v0  ;;  %63 = vst.msk [vmem:[#allocation4 + $0x10] sm:$0xff] %vm54_vm2, %v1232_v0 }
  0x2c   :  { %1072 = vmatprep.mubr.msk.f32.mxu1 %vm1233_vm1, %v1232_v0  ;;  %342 = vadd.xlane.f32.xlu0 %v68_v1  ;;  %v340_v4 = vld [vmem:[#allocation5 + $0x8] sm:$0xff]  ;;  %v339_v9 = vld [vmem:[#allocation5] sm:$0xff] }
  0x2d   :  { %1104 = vmatprep.subr.mxu0 %v1232_v0  ;;  %v341_v5 = vld [vmem:[#allocation5 + $0x10] sm:$0xff] }
  0x2e   :  { %1062 = vmatmul.mubr.f32.gmra.mxu0 %v69_v2  ;;  %1073 = vmatmul.mubr.f32.gmra.mxu1 %v69_v2  ;;  %v71_v25 = vld [vmem:[#allocation2] sm:$0xff]  ;;  %v72_v33 = vld [vmem:[#allocation2 + $0x8] sm:$0xff] }
  0x2f   :  { %1064 = vmatprep.mubr.msk.f32.mxu0 %vm1233_vm1, %v1232_v0  ;;  %1075 = vmatprep.mubr.msk.f32.mxu1 %vm1233_vm1, %v1232_v0  ;;  %v161_v26 = vld [vmem:[#allocation3] sm:$0xff]  ;;  %v73_v41 = vld [vmem:[#allocation2 + $0x10] sm:$0xff] }
  0x30   :  { %v162_v34 = vld [vmem:[#allocation3 + $0x8] sm:$0xff]  ;;  %v163_v43 = vld [vmem:[#allocation3 + $0x10] sm:$0xff] }
  0x31   :  { %v250_v52 = vld [vmem:[#allocation4] sm:$0xff]  ;;  %v251_v58 = vld [vmem:[#allocation4 + $0x8] sm:$0xff] }
  0x32   :  { %1065 = vmatmul.mubr.f32.gmra.mxu0 %v70_v3  ;;  %1076 = vmatmul.mubr.f32.gmra.mxu1 %v70_v3 }
  0x33   :  { %1080 = vmatprep.mubr.msk.f32.mxu0 %vm1233_vm1, %v1232_v0  ;;  %1091 = vmatprep.mubr.msk.f32.mxu1 %vm1233_vm1, %v1232_v0 }
  0x36   :  { %1081 = vmatmul.mubr.f32.vlgmr.msra.gmra.mxu0 %v68_v1 }
  0x37   :  { %1083 = vmatprep.mubr.msk.f32.mxu0 %vm1233_vm1, %v1232_v0 }
  0x3a   :  { %1084 = vmatmul.mubr.f32.gmra.mxu0 %v69_v2 }
  0x3b   :  { %1086 = vmatprep.mubr.msk.f32.mxu0 %vm1233_vm1, %v1232_v0 }
  0x3e   :  { %1087 = vmatmul.mubr.f32.gmra.mxu0 %v70_v3  ;;  %v252_v3 = vld [vmem:[#allocation4 + $0x10] sm:$0xff] }
  0x3f   :  { %1106 = vmatprep.mubr.msk.f32.mxu0 %vm1233_vm1, %v1232_v0 }
  0xb1   :  { %v345_v6 = vpop.xlane.xlu0 %344 }
  0xb2   :  { %v349_v7 = vadd.f32 %v345_v6, %v340_v4  ;;  %v347_v8 = vpop.xlane.xlu1 %346 }
  0xb3   :  { %v350_v10 = vadd.f32 %v347_v8, %v341_v5 }
  0xb4   :  { %353 = vst.msk [vmem:[#allocation5 + $0x8] sm:$0xff] %vm64_vm0, %v349_v7 }
  0xb5   :  { %v343_v11 = vpop.xlane.xlu0 %342  ;;  %354 = vst.msk [vmem:[#allocation5 + $0x10] sm:$0xff] %vm64_vm0, %v350_v10 }
  0xb6   :  { %v348_v12 = vadd.f32 %v343_v11, %v339_v9 }
  0xb8   :  { %352 = vst.msk [vmem:[#allocation5] sm:$0xff] %vm64_vm0, %v348_v12 }
  0xbb   :  { %v359_v13 = vld [vmem:[#allocation5 + $0x8] sm:$0xff] }
  0xbc   :  { %v1318_v14 = vmul.f32 0.03125, %v359_v13  ;;  %v360_v15 = vld [vmem:[#allocation5 + $0x10] sm:$0xff] }
  0xbd   :  { %v1320_v16 = vmul.f32 0.03125, %v360_v15 }
  0xbe   :  { %1090 = vmatpush3.msra.mxu1 %v1318_v14 }
  0xbf   :  { %v358_v17 = vld [vmem:[#allocation5] sm:$0xff]  ;;  %1094 = vmatprep.subr.mxu1 %v1232_v0  ;;  %v811_v20 = vmul.f32 %v1320_v16, %v1318_v14 }
  0xc0   :  { %v1324_v18 = vmul.f32 0.03125, %v358_v17 }
  0xc1   :  { %v812_v24 = vsel %vm64_vm0, %v811_v20, 0.0 }
  0xc2   :  { %v387_v19 = vmul.f32 %v1318_v14, %v1324_v18  ;;  %v600_v21 = vmul.f32 %v1320_v16, %v1324_v18  ;;  %1105 = vmatpush3.msra.mxu0 %v1324_v18 }
  0xc3   :  { %1114 = vmatprep.subr.mxu0 %v1232_v0 }
  0xc4   :  { %v388_v22 = vsel %vm64_vm0, %v387_v19, 0.0  ;;  %v601_v23 = vsel %vm64_vm0, %v600_v21, 0.0 }
  0xc5   :  { %389 = vadd.xlane.f32.xlu0 %v388_v22  ;;  %602 = vadd.xlane.f32.xlu1 %v601_v23 }
  0xc9   :  { %813 = vadd.xlane.f32.xlu0 %v812_v24 }
  0xea   :  { %v140_v27 = vpop.f32.mrf.mxu0  ;;  %v230_v28 = vpop.f32.mrf.mxu1 }
  0xeb   :  { %v154_v29 = vadd.f32 %v140_v27, %v71_v25  ;;  %v244_v30 = vadd.f32 %v230_v28, %v161_v26 }
  0xec   :  { %v1060_v31 = vpop.f32.mrf.mxu0  ;;  %v1071_v32 = vpop.f32.mrf.mxu1 }
  0xed   :  { %158 = vst.msk [vmem:[#allocation2] sm:$0xff] %vm54_vm2, %v154_v29  ;;  %247 = vst.msk [vmem:[#allocation3] sm:$0xff] %vm54_vm2, %v244_v30 }
  0xee   :  { %v145_v35 = vpop.f32.mrf.mxu0  ;;  %v235_v36 = vpop.f32.mrf.mxu1 }
  0xef   :  { %v155_v38 = vadd.f32 %v145_v35, %v72_v33  ;;  %v245_v39 = vadd.f32 %v235_v36, %v162_v34 }
  0xf0   :  { %v1063_v40 = vpop.f32.mrf.mxu0  ;;  %v1074_v42 = vpop.f32.mrf.mxu1 }
  0xf1   :  { %159 = vst.msk [vmem:[#allocation2 + $0x8] sm:$0xff] %vm54_vm2, %v155_v38  ;;  %248 = vst.msk [vmem:[#allocation3 + $0x8] sm:$0xff] %vm54_vm2, %v245_v39 }
  0xf2   :  { %v150_v44 = vpop.f32.mrf.mxu0  ;;  %v240_v45 = vpop.f32.mrf.mxu1 }
  0xf3   :  { %v156_v48 = vadd.f32 %v150_v44, %v73_v41  ;;  %v246_v49 = vadd.f32 %v240_v45, %v163_v43 }
  0xf4   :  { %v1066_v50 = vpop.f32.mrf.mxu0  ;;  %v364_v51 = vld [vmem:[#allocation2] sm:$0xff]  ;;  %v1077_v53 = vpop.f32.mrf.mxu1 }
  0xf5   :  { %160 = vst.msk [vmem:[#allocation2 + $0x10] sm:$0xff] %vm54_vm2, %v156_v48  ;;  %1092 = vmatmul.mubr.msk.f32.vlgmr.msra.gmra.mxu1 %vm54_vm2, %v364_v51  ;;  %249 = vst.msk [vmem:[#allocation3 + $0x10] sm:$0xff] %vm54_vm2, %v246_v49 }
  0xf6   :  { %v319_v54 = vpop.f32.mrf.mxu0  ;;  %1095 = vmatpush3.msra.mxu1 %v1324_v18  ;;  %1096 = vmatprep.mubr.msk.f32.mxu1 %vm1233_vm1, %v1232_v0 }
  0xf7   :  { %v333_v55 = vadd.f32 %v319_v54, %v250_v52  ;;  %1099 = vmatprep.subr.mxu1 %v1232_v0 }
  0xf8   :  { %v1082_v56 = vpop.f32.mrf.mxu0  ;;  %v367_v57 = vld [vmem:[#allocation3 + $0x8] sm:$0xff]  ;;  %v365_v59 = vld [vmem:[#allocation2 + $0x8] sm:$0xff] }
  0xf9   :  { %336 = vst.msk [vmem:[#allocation4] sm:$0xff] %vm54_vm2, %v333_v55  ;;  %1097 = vmatmul.mubr.msk.f32.vlgmr.msra.gmra.mxu1 %vm54_vm2, %v367_v57  ;;  %v375_v60 = vsel %vm374_vm3, %v365_v59, 0.0  ;;  %v398_v63 = vmul.f32 %v367_v57, %v364_v51 }
  0xfa   :  { %v324_v61 = vpop.f32.mrf.mxu0  ;;  %v376_v62 = vsel %vm54_vm2, %v375_v60, 0.0  ;;  %1100 = vmatpush3.msra.mxu1 %v1320_v16  ;;  %1101 = vmatprep.mubr.msk.f32.mxu1 %vm1233_vm1, %v1232_v0 }
  0xfb   :  { %v334_v1 = vadd.f32 %v324_v61, %v251_v58  ;;  %377 = vadd.xlane.f32.xlu1 %v376_v62  ;;  %1109 = vmatprep.subr.mxu1 %v1232_v0  ;;  %v399_v10 = vsel %vm54_vm2, %v398_v63, 0.0 }
  0xfc   :  { %v1085_v2 = vpop.f32.mrf.mxu0  ;;  %v366_v4 = vld [vmem:[#allocation2 + $0x10] sm:$0xff]  ;;  %v368_v5 = vld [vmem:[#allocation3 + $0x10] sm:$0xff] }
  0xfd   :  { %337 = vst.msk [vmem:[#allocation4 + $0x8] sm:$0xff] %vm54_vm2, %v334_v1  ;;  %1102 = vmatmul.mubr.msk.f32.vlgmr.msra.gmra.mxu1 %vm54_vm2, %v364_v51  ;;  %v588_v6 = vsel %vm374_vm3, %v366_v4, 0.0  ;;  %v799_v7 = vsel %vm374_vm3, %v368_v5, 0.0 }
  0xfe   :  { %v329_v8 = vpop.f32.mrf.mxu0  ;;  %v589_v9 = vsel %vm54_vm2, %v588_v6, 0.0  ;;  %1110 = vmatpush3.msra.mxu1 %v1320_v16  ;;  %1111 = vmatprep.mubr.msk.f32.mxu1 %vm1233_vm1, %v1232_v0  ;;  %v800_v13 = vsel %vm54_vm2, %v799_v7, 0.0 }
  0xff   :  { %v335_v11 = vadd.f32 %v329_v8, %v252_v3  ;;  %590 = vadd.xlane.f32.xlu0 %v589_v9  ;;  %400 = vadd.xlane.f32.xlu1 %v399_v10 }
 0x100   :  { %v1088_v12 = vpop.f32.mrf.mxu0 }
 0x101   :  { %338 = vst.msk [vmem:[#allocation4 + $0x10] sm:$0xff] %vm54_vm2, %v335_v11  ;;  %1112 = vmatmul.mubr.msk.f32.vlgmr.msra.gmra.mxu1 %vm54_vm2, %v367_v57 }
 0x103   :  { %801 = vadd.xlane.f32.xlu1 %v800_v13 }
 0x108   :  { %v369_v15 = vld [vmem:[#allocation4 + $0x10] sm:$0xff] }
 0x109   :  { %1107 = vmatmul.mubr.msk.f32.vlgmr.msra.gmra.mxu0 %vm54_vm2, %v369_v15  ;;  %v611_v17 = vmul.f32 %v369_v15, %v364_v51  ;;  %v822_v19 = vmul.f32 %v369_v15, %v367_v57 }
 0x10a   :  { %1115 = vmatpush3.msra.mxu0 %v1318_v14  ;;  %1116 = vmatprep.mubr.msk.f32.mxu0 %vm1233_vm1, %v1232_v0 }
 0x10b   :  { %v612_v20 = vsel %vm54_vm2, %v611_v17, 0.0  ;;  %v823_v21 = vsel %vm54_vm2, %v822_v19, 0.0 }
 0x10c   :  { %613 = vadd.xlane.f32.xlu0 %v612_v20  ;;  %824 = vadd.xlane.f32.xlu1 %v823_v21 }
 0x10d   :  { %1117 = vmatmul.mubr.msk.f32.vlgmr.msra.gmra.mxu0 %vm54_vm2, %v369_v15 }
 0x14e   :  { %v390_v22 = vpop.xlane.xlu0 %389  ;;  %v603_v25 = vpop.xlane.xlu1 %602 }
 0x14f   :  { %v391_v23 = vrot.slane %v390_v22, 4  ;;  %v604_v8 = vrot.slane %v603_v25, 4 }
 0x151   :  { %v392_v24 = vadd.f32 %v391_v23, %v390_v22  ;;  %v605_v12 = vadd.f32 %v604_v8, %v603_v25 }
 0x152   :  { %v814_v4 = vpop.xlane.xlu0 %813 }
 0x153   :  { %v393_v26 = vrot.slane %v392_v24, 2  ;;  %v606_v20 = vrot.slane %v605_v12, 2 }
 0x155   :  { %v394_v29 = vadd.f32 %v393_v26, %v392_v24 }
 0x157   :  { %v395_v33 = vrot.slane %v394_v29, 1 }
 0x159   :  { %v396_v38 = vadd.f32 %v395_v33, %v394_v29 }
 0x184   :  { %v378_v27 = vpop.xlane.xlu1 %377 }
 0x185   :  { %v379_v28 = vrot.slane %v378_v27, 4 }
 0x187   :  { %v380_v30 = vadd.f32 %v379_v28, %v378_v27 }
 0x188   :  { %v401_v31 = vpop.xlane.xlu1 %400  ;;  %v591_v5 = vpop.xlane.xlu0 %590 }
 0x189   :  { %v381_v32 = vrot.slane %v380_v30, 2  ;;  %v402_v0 = vrot.slane %v401_v31, 4  ;;  %v592_v7 = vrot.slane %v591_v5, 4 }
 0x18b   :  { %v403_v34 = vadd.f32 %v402_v0, %v401_v31  ;;  %v382_v35 = vadd.f32 %v381_v32, %v380_v30  ;;  %v593_v9 = vadd.f32 %v592_v7, %v591_v5  ;;  %v607_v32 = vadd.f32 %v606_v20, %v605_v12 }
 0x18c   :  { %v802_v6 = vpop.xlane.xlu1 %801 }
 0x18d   :  { %v404_v36 = vrot.slane %v403_v34, 2  ;;  %v383_v37 = vrot.slane %v382_v35, 1  ;;  %v594_v17 = vrot.slane %v593_v9, 2 }
 0x18f   :  { %v384_v39 = vadd.f32 %v383_v37, %v382_v35  ;;  %v405_v40 = vadd.f32 %v404_v36, %v403_v34  ;;  %v595_v28 = vadd.f32 %v594_v17, %v593_v9  ;;  %v803_v35 = vrot.slane %v802_v6, 4 }
 0x190   :  { %v815_v37 = vrot.slane %v814_v4, 4 }
 0x191   :  { %1119 = vpush %v384_v39  ;;  %v406_v41 = vrot.slane %v405_v40, 1  ;;  %v596_v36 = vrot.slane %v595_v28, 1 }
 0x192   :  { %1121 = vpush %v396_v38 }
 0x193   :  { %v407_v42 = vadd.f32 %v406_v41, %v405_v40  ;;  %v608_v40 = vrot.slane %v607_v32, 1 }
 0x195   :  { %1123 = vpush %v407_v42  ;;  %v825_v10 = vpop.xlane.xlu1 %824 }
 0x196   :  { %v826_v41 = vrot.slane %v825_v10, 4 }
 0x1b5   :  { %v478_v43 = vpop.f32.mrf.mxu1 }
 0x1b6   :  { %v482_v44 = vmul.f32 %v478_v43, %v1318_v14 }
 0x1b7   :  { %v1093_v45 = vpop.f32.mrf.mxu1 }
 0x1b8   :  { %v483_v46 = vsel %vm64_vm0, %v482_v44, 0.0  ;;  %v804_v45 = vadd.f32 %v803_v35, %v802_v6 }
 0x1b9   :  { %484 = vadd.xlane.f32.xlu0 %v483_v46  ;;  %v564_v47 = vpop.f32.mrf.mxu1  ;;  %v597_v46 = vadd.f32 %v596_v36, %v595_v28 }
 0x1ba   :  { %v568_v48 = vmul.f32 %v564_v47, %v1324_v18  ;;  %v816_v47 = vadd.f32 %v815_v37, %v814_v4 }
 0x1bb   :  { %v1098_v49 = vpop.f32.mrf.mxu1 }
 0x1bc   :  { %v569_v50 = vsel %vm64_vm0, %v568_v48, 0.0  ;;  %v609_v48 = vadd.f32 %v608_v40, %v607_v32 }
 0x1bd   :  { %v688_v51 = vpop.f32.mrf.mxu1  ;;  %570 = vadd.xlane.f32.xlu1 %v569_v50  ;;  %v827_v50 = vadd.f32 %v826_v41, %v825_v10 }
 0x1be   :  { %v692_v52 = vmul.f32 %v688_v51, %v1320_v16 }
 0x1bf   :  { %v1103_v53 = vpop.f32.mrf.mxu1 }
 0x1c0   :  { %v693_v54 = vsel %vm64_vm0, %v692_v52, 0.0  ;;  %v805_v53 = vrot.slane %v804_v45, 2 }
 0x1c1   :  { %v899_v55 = vpop.f32.mrf.mxu1  ;;  %694 = vadd.xlane.f32.xlu1 %v693_v54 }
 0x1c2   :  { %v903_v60 = vmul.f32 %v899_v55, %v1320_v16  ;;  %v817_v55 = vrot.slane %v816_v47, 2  ;;  %s1387_s0 = spop %1119 }
 0x1c3   :  { %v1113_v56 = vpop.f32.mrf.mxu1  ;;  %s1122_s2 = spop %1121 }
 0x1c4   :  { %v904_v2 = vsel %vm64_vm0, %v903_v60, 0.0  ;;  %s581_s6 = smul.f32 1024.0, %s1122_s2 }
 0x1c6   :  { %s1124_s26 = spop %1123  ;;  %s582_s12 = smul.f32 %s1122_s2, %s581_s6 }
 0x1c9   :  { %v774_v57 = vpop.f32.mrf.mxu0 }
 0x1ca   :  { %v778_v58 = vmul.f32 %v774_v57, %v1324_v18  ;;  %v614_v18 = vpop.xlane.xlu0 %613  ;;  %v828_v57 = vrot.slane %v827_v50, 2 }
 0x1cb   :  { %v1108_v59 = vpop.f32.mrf.mxu0  ;;  %v615_v16 = vrot.slane %v614_v18, 4 }
 0x1cc   :  { %v779_v61 = vsel %vm64_vm0, %v778_v58, 0.0 }
 0x1cd   :  { %v982_v62 = vpop.f32.mrf.mxu0  ;;  %780 = vadd.xlane.f32.xlu0 %v779_v61  ;;  %v806_v61 = vadd.f32 %v805_v53, %v804_v45 }
 0x1ce   :  { %v986_v63 = vmul.f32 %v982_v62, %v1318_v14  ;;  %v616_v14 = vadd.f32 %v615_v16, %v614_v18 }
 0x1cf   :  { %v1118_v1 = vpop.f32.mrf.mxu0  ;;  %v807_v18 = vrot.slane %v806_v61, 1 }
 0x1d0   :  { %v987_v3 = vsel %vm64_vm0, %v986_v63, 0.0  ;;  %v617_v23 = vrot.slane %v616_v14, 2 }
 0x1d1   :  { %905 = vadd.xlane.f32.xlu0 %v904_v2  ;;  %988 = vadd.xlane.f32.xlu1 %v987_v3  ;;  %v818_v2 = vadd.f32 %v817_v55, %v816_v47  ;;  %v829_v3 = vadd.f32 %v828_v57, %v827_v50 }
 0x1d2   :  { %v618_v0 = vadd.f32 %v617_v23, %v616_v14  ;;  %v808_v14 = vadd.f32 %v807_v18, %v806_v61 }
 0x1d3   :  { %v819_v9 = vrot.slane %v818_v2, 1  ;;  %v830_v10 = vrot.slane %v829_v3, 1 }
 0x1d4   :  { %v619_v42 = vrot.slane %v618_v0, 1 }
 0x1d5   :  { %v831_v20 = vadd.f32 %v830_v10, %v829_v3 }
 0x1d6   :  { %v620_v51 = vadd.f32 %v619_v42, %v618_v0 }
 0x242   :  { %v485_v11 = vpop.xlane.xlu0 %484 }
 0x243   :  { %v486_v13 = vrot.slane %v485_v11, 4 }
 0x245   :  { %v487_v15 = vadd.f32 %v486_v13, %v485_v11 }
 0x246   :  { %v571_v19 = vpop.xlane.xlu1 %570 }
 0x247   :  { %v488_v21 = vrot.slane %v487_v15, 2  ;;  %v572_v22 = vrot.slane %v571_v19, 4 }
 0x249   :  { %v573_v24 = vadd.f32 %v572_v22, %v571_v19  ;;  %v489_v26 = vadd.f32 %v488_v21, %v487_v15  ;;  %v820_v15 = vadd.f32 %v819_v9, %v818_v2 }
 0x24a   :  { %v695_v27 = vpop.xlane.xlu1 %694 }
 0x24b   :  { %v574_v29 = vrot.slane %v573_v24, 2  ;;  %v696_v30 = vrot.slane %v695_v27, 4  ;;  %v490_v31 = vrot.slane %v489_v26, 1 }
 0x24d   :  { %v697_v33 = vadd.f32 %v696_v30, %v695_v27  ;;  %v491_v25 = vadd.f32 %v490_v31, %v489_v26  ;;  %v575_v34 = vadd.f32 %v574_v29, %v573_v24 }
 0x24f   :  { %v698_v38 = vrot.slane %v697_v33, 2  ;;  %1125 = vpush %v491_v25  ;;  %v576_v39 = vrot.slane %v575_v34, 1 }
 0x251   :  { %v577_v43 = vadd.f32 %v576_v39, %v575_v34  ;;  %v699_v44 = vadd.f32 %v698_v38, %v697_v33 }
 0x253   :  { %1127 = vpush %v577_v43  ;;  %v700_v49 = vrot.slane %v699_v44, 1 }
 0x254   :  { %1129 = vpush %v597_v46 }
 0x255   :  { %1131 = vpush %v609_v48  ;;  %v701_v52 = vadd.f32 %v700_v49, %v699_v44 }
 0x256   :  { %1133 = vpush %v620_v51  ;;  %v781_v54 = vpop.xlane.xlu0 %780 }
 0x257   :  { %v782_v56 = vrot.slane %v781_v54, 4  ;;  %1135 = vpush %v701_v52 }
 0x259   :  { %v783_v58 = vadd.f32 %v782_v56, %v781_v54 }
 0x25a   :  { %v906_v59 = vpop.xlane.xlu0 %905  ;;  %v989_v60 = vpop.xlane.xlu1 %988 }
 0x25b   :  { %v784_v62 = vrot.slane %v783_v58, 2  ;;  %v907_v63 = vrot.slane %v906_v59, 4  ;;  %v990_v1 = vrot.slane %v989_v60, 4 }
 0x25d   :  { %v908_v4 = vadd.f32 %v907_v63, %v906_v59  ;;  %v991_v5 = vadd.f32 %v990_v1, %v989_v60  ;;  %v785_v6 = vadd.f32 %v784_v62, %v783_v58 }
 0x25f   :  { %v909_v7 = vrot.slane %v908_v4, 2  ;;  %v992_v8 = vrot.slane %v991_v5, 2  ;;  %v786_v16 = vrot.slane %v785_v6, 1 }
 0x261   :  { %v910_v11 = vadd.f32 %v909_v7, %v908_v4  ;;  %v993_v12 = vadd.f32 %v992_v8, %v991_v5  ;;  %v787_v13 = vadd.f32 %v786_v16, %v785_v6 }
 0x263   :  { %1137 = vpush %v787_v13  ;;  %v911_v17 = vrot.slane %v910_v11, 1  ;;  %v994_v19 = vrot.slane %v993_v12, 1 }
 0x264   :  { %1139 = vpush %v808_v14 }
 0x265   :  { %1141 = vpush %v820_v15  ;;  %v912_v21 = vadd.f32 %v911_v17, %v910_v11  ;;  %v995_v22 = vadd.f32 %v994_v19, %v993_v12 }
 0x266   :  { %1143 = vpush %v831_v20 }
 0x267   :  { %1145 = vpush %v912_v21 }
 0x268   :  { %1147 = vpush %v995_v22 }
 0x280   :  { %s1126_s27 = spop %1125 }
 0x281   :  { %s493_s30 = smul.f32 32.0, %s1126_s27 }
 0x283   :  { %s494_s8 = ssub.f32 %s1124_s26, %s493_s30 }
 0x284   :  { %s1128_s28 = spop %1127 }
 0x285   :  { %s1389_s29 = spop %1129  ;;  %s579_s5 = smul.f32 32.0, %s1128_s28 }
 0x286   :  { %s1132_s4 = spop %1131 }
 0x287   :  { %s1134_s7 = spop %1133  ;;  %s580_s10 = ssub.f32 %s494_s8, %s579_s5 }
 0x288   :  { %s1136_s9 = spop %1135  ;;  %s791_s13 = smul.f32 1024.0, %s1132_s4 }
 0x289   :  { %s703_s11 = smul.f32 32.0, %s1136_s9  ;;  %s583_s14 = sadd.f32 %s582_s12, %s580_s10 }
 0x28a   :  { %s792_s19 = smul.f32 %s1132_s4, %s791_s13 }
 0x28b   :  { %s704_s15 = ssub.f32 %s1134_s7, %s703_s11  ;;  %s584_s22 = smul.f32 0.0010405828, %s583_s14 }
 0x28c   :  { %s599_s9 = smul.f32 0.125, %s1389_s29 }
 0x28d   :  { %s585_s6 = smul.f32 0.125, %s584_s22  ;;  %s1234_s22 = smov [#allocation12]  }
 0x28e   :  { %s386_s13 = smul.f32 0.125, %s1387_s0 }
 0x28f   :  { %s586_s11 = smul.f32 0.5, %s585_s6 }
 0x294   :  { %s1138_s16 = spop %1137 }
 0x295   :  { %s789_s17 = smul.f32 32.0, %s1138_s16  ;;  %s1391_s18 = spop %1139 }
 0x296   :  { %s1142_s21 = spop %1141  ;;  %s587_s16 = ssub.f32 %s386_s13, %s586_s11 }
 0x297   :  { %s790_s20 = ssub.f32 %s704_s15, %s789_s17  ;;  %s1144_s24 = spop %1143 }
 0x298   :  { %s999_s1 = smul.f32 1024.0, %s1142_s21  ;;  %s1146_s25 = spop %1145 }
 0x299   :  { %s793_s23 = sadd.f32 %s792_s19, %s790_s20  ;;  %s1148_s27 = spop %1147 }
 0x29a   :  { %s914_s2 = smul.f32 32.0, %s1146_s25 }
 0x29b   :  { %s794_s26 = smul.f32 0.0010405828, %s793_s23 }
 0x29c   :  { %s915_s30 = ssub.f32 %s1144_s24, %s914_s2  ;;  %s997_s5 = smul.f32 32.0, %s1148_s27 }
 0x29d   :  { %s795_s28 = smul.f32 0.125, %s794_s26 }
 0x29e   :  { %s1000_s7 = smul.f32 %s1142_s21, %s999_s1  ;;  %s998_s8 = ssub.f32 %s915_s30, %s997_s5 }
 0x29f   :  { %s796_s4 = smul.f32 0.5, %s795_s28 }
 0x2a0   :  { %s1001_s10 = sadd.f32 %s1000_s7, %s998_s8  ;;  %s810_s17 = smul.f32 0.125, %s1391_s18 }
 0x2a1   :  { %s797_s14 = ssub.f32 %s599_s9, %s796_s4 }
 0x2a2   :  { %s1002_s12 = smul.f32 0.0010405828, %s1001_s10 }
 0x2a3   :  { %s798_s20 = sadd.f32 %s797_s14, %s587_s16 }
 0x2a4   :  { %s1003_s15 = smul.f32 0.125, %s1002_s12 }
 0x2a6   :  { %s1004_s19 = smul.f32 0.5, %s1003_s15 }
 0x2a8   :  { %s1005_s23 = ssub.f32 %s810_s17, %s1004_s19 }
 0x2aa   :  { %s1006_s25 = sadd.f32 %s1005_s23, %s798_s20 }
 0x2ac   :  { %s1007_s26 = ssub.f32 0.0, %s1006_s25 }
 0x2ae   :  { %s1008_s24 = smul.f32 0.125, %s1007_s26 }
 0x2b0   :  { %1010 = sst [smem:[#allocation12]] %s1008_s24 }
 0x2b1   :  { %1018 = dma.smem_to_hbm %s1234_s22, 16, %s1402_s3, [#allocation8]  }
 0x2b2   :  { %1227 = dma.done.wait [#allocation8], 16  }
 0x2b3   :  { %1228 = vsyncadd [#allocation8], 4294967280 }
 0x2b4   :  { %1022 = sfence }
 0x2b5   :  { %1023 = vsyncpa [#allocation7], 1 }
 0x2b6   :  { %1024 = vsyncpa [#allocation10], 1 }
 0x2b7   :  { %1025 = vsyncpa [#allocation8], 1 }

</bundles_post_ra>
